<compile_context>
chip_gen: v6e
topology: v6e:2x2x1
jax: 0.10.0
libtpu: 0.0.40
codegen_flags: <defaults>
</compile_context>

<pallas_src>
import jax
import jax.numpy as jnp
from jax import lax
from jax.experimental import pallas as pl
from jax.experimental.pallas import tpu as pltpu


# ---------------------------------------------------------------------------
# Hardware-aware sizing helpers
# ---------------------------------------------------------------------------

def _vmem_budget_bytes() -> int:
    """~75% of this generation's per-core VMEM (v5e/v6e: 128 MiB, v7x: 64 MiB)."""
    cap = 64 << 20  # conservative default = v7x per-TensorCore VMEM
    try:
        info = pltpu.get_tpu_info()
        cap = int(getattr(info, "vmem_capacity_bytes", cap))
    except Exception:
        pass
    return max(16 << 20, min((cap * 3) // 4, cap - (4 << 20)))


_TARGET_BLOCK_BYTES = 8 << 20   # ~6-8 MiB blocks keep the ~0.35us/step tax <10%
_MIN_GRID_STEPS = 4             # 2 (megacore shards) x 2 (pipeline overlap)
_VMEM_MARGIN = 4 << 20          # headroom for compiler-internal scratch


def _pick_batch_tile(B, C, per_sample_bytes, bt_vmem_cap, flat):
    """Largest batch tile that fits the VMEM cap, aims at ~8 MiB blocks and
    keeps >= min(B, 4) grid steps; respects divisibility + sublane rules."""

    def layout_ok(bt):
        if B % bt:
            return False
        if flat and (bt * C) % 8 != 0 and bt != B:
            return False  # (8, *) sublane rule for the flattened (Bt*C, HW) block
        return True

    bt_target = max(1, _TARGET_BLOCK_BYTES // max(per_sample_bytes, 1))
    min_steps = min(B, _MIN_GRID_STEPS)
    cap = max(1, min(B, bt_vmem_cap, bt_target, max(1, B // min_steps)))
    for cand in range(cap, 0, -1):
        if layout_ok(cand):
            return cand
    # Nothing <= cap satisfies the layout rules; take the smallest larger tile
    # that still fits the VMEM cap (fewer grid steps is fine, it is HBM-bound).
    for cand in range(cap + 1, min(B, bt_vmem_cap) + 1):
        if layout_ok(cand):
            return cand
    return None


# ---------------------------------------------------------------------------
# Single-pass kernel, flattened (Bt*C, HW) layout  (used when C % 8 != 0)
# ---------------------------------------------------------------------------

def _make_flat_kernel(bt, C, HW, precision):
    R = bt * C
    inv_hw = 1.0 / float(HW)

    def kernel(x_ref, w1t_ref, b1_ref, w2t_ref, b2t_ref, o_ref):
        # x_ref: (R, HW)    w1t_ref/w2t_ref: (R, Cr) (row-tiled per batch tile)
        # b1_ref: (1, Cr)   b2t_ref: (R, 1)

        # --- squeeze: per-(batch, channel) row mean over HW, f32 accumulate --
        v = jnp.sum(x_ref[...].astype(jnp.float32), axis=1, keepdims=True) * inv_hw  # (R,1)

        # Tiny batch-selector masks (iota + compare only; keeps channel mixing
        # on the MXU with no in-kernel reshape/transpose of distributed data).
        r_ids = lax.broadcasted_iota(jnp.int32, (bt, R), 1)
        b_off = lax.broadcasted_iota(jnp.int32, (bt, R), 0) * C
        bsel = ((r_ids >= b_off) & (r_ids < b_off + C)).astype(jnp.float32)      # (bt, R)
        r_ids_t = lax.broadcasted_iota(jnp.int32, (R, bt), 0)
        b_off_t = lax.broadcasted_iota(jnp.int32, (R, bt), 1) * C
        bsel_t = ((r_ids_t >= b_off_t) & (r_ids_t < b_off_t + C)).astype(jnp.float32)  # (R, bt)

        # --- excite: 1x1 conv -> ReLU -> 1x1 conv -> Hardsigmoid (f32, MXU) --
        h = jnp.dot(bsel, v * w1t_ref[...].astype(jnp.float32),
                    preferred_element_type=jnp.float32, precision=precision)     # (bt, Cr)
        h = jnp.maximum(h + b1_ref[...], 0.0)
        hr = jnp.dot(bsel_t, h,
                     preferred_element_type=jnp.float32, precision=precision)    # (R, Cr)
        z = jnp.sum(hr * w2t_ref[...].astype(jnp.float32), axis=1, keepdims=True)
        z = z + b2t_ref[...]
        gate = (jnp.clip(z + 3.0, 0.0, 6.0) / 6.0).astype(o_ref.dtype)           # (R, 1)

        # --- scale: re-read x, multiply in the I/O dtype (bf16 stays bf16) ---
        o_ref[...] = x_ref[...] * gate

    return kernel


def _se_flat(x, w1, b1, w2, b2, bt, budget, precision, param_dtype):
    B, C, H, W = x.shape
    Cr = w1.shape[0]
    HW = H * W
    dtype = x.dtype
    R = bt * C

    x2 = x.reshape(B * C, HW)  # contiguous collapse: free, no HBM traffic
    # Row-tiled excite parameters (tiny on this small-C path).
    w1t = jnp.tile(jnp.asarray(w1, param_dtype).T, (bt, 1))          # (R, Cr)
    w2t = jnp.tile(jnp.asarray(w2, param_dtype), (bt, 1))            # (R, Cr)
    b1r = jnp.asarray(b1, jnp.float32).reshape(1, Cr)
    b2r = jnp.tile(jnp.asarray(b2, jnp.float32), bt).reshape(R, 1)

    out = pl.pallas_call(
        _make_flat_kernel(bt, C, HW, precision),
        out_shape=jax.ShapeDtypeStruct((B * C, HW), dtype),
        grid_spec=pltpu.PrefetchScalarGridSpec(
            num_scalar_prefetch=0,
            grid=(B // bt,),
            in_specs=[
                pl.BlockSpec((R, HW), lambda i: (i, 0)),   # x rows (batch tile)
                # Grid-invariant params; their default double-buffer cost is
                # already accounted for in the VMEM budget below.
                pl.BlockSpec((R, Cr), lambda i: (0, 0)),
                pl.BlockSpec((1, Cr), lambda i: (0, 0)),
                pl.BlockSpec((R, Cr), lambda i: (0, 0)),
                pl.BlockSpec((R, 1), lambda i: (0, 0)),
            ],
            out_specs=pl.BlockSpec((R, HW), lambda i: (i, 0)),
        ),
        compiler_params=pltpu.CompilerParams(
            dimension_semantics=("parallel",),
            vmem_limit_bytes=int(budget)),
    )(x2, w1t, b1r, w2t, b2r)
    return out.reshape(B, C, H, W)


# ---------------------------------------------------------------------------
# Single-pass kernel, (Bt, C, HW) blocks  (used when C % 8 == 0)
# ---------------------------------------------------------------------------

def _make_blocked_kernel(HW, precision):
    inv_hw = 1.0 / float(HW)

    def kernel(x_ref, w1_ref, b1_ref, w2_ref, b2_ref, o_ref):
        # x_ref: (Bt, C, HW)  w1_ref: (C, Cr)  b1: (1, Cr)  w2_ref: (Cr, C)  b2: (1, C)
        pooled = jnp.sum(x_ref[...].astype(jnp.float32), axis=2) * inv_hw         # (Bt, C)
        h = jnp.dot(pooled, w1_ref[...].astype(jnp.float32),
                    preferred_element_type=jnp.float32, precision=precision)
        h = jnp.maximum(h + b1_ref[...], 0.0)                                     # (Bt, Cr)
        s = jnp.dot(h, w2_ref[...].astype(jnp.float32),
                    preferred_element_type=jnp.float32, precision=precision) + b2_ref[...]
        gate = (jnp.clip(s + 3.0, 0.0, 6.0) / 6.0).astype(o_ref.dtype)            # (Bt, C)
        o_ref[...] = x_ref[...] * gate[:, :, None]

    return kernel


def _se_blocked(x, w1, b1, w2, b2, bt, budget, precision, param_dtype):
    B, C, H, W = x.shape
    Cr = w1.shape[0]
    HW = H * W
    dtype = x.dtype
    x3 = x.reshape(B, C, HW)  # contiguous collapse: free

    w1t = jnp.asarray(w1, param_dtype).T              # (C, Cr)
    w2t = jnp.asarray(w2, param_dtype).T              # (Cr, C)
    b1r = jnp.asarray(b1, jnp.float32).reshape(1, Cr)
    b2r = jnp.asarray(b2, jnp.float32).reshape(1, C)

    out = pl.pallas_call(
        _make_blocked_kernel(HW, precision),
        out_shape=jax.ShapeDtypeStruct((B, C, HW), dtype),
        grid_spec=pltpu.PrefetchScalarGridSpec(
            num_scalar_prefetch=0,
            grid=(B // bt,),
            in_specs=[
                pl.BlockSpec((bt, C, HW), lambda i: (i, 0, 0)),
                pl.BlockSpec((C, Cr), lambda i: (0, 0)),
                pl.BlockSpec((1, Cr), lambda i: (0, 0)),
                pl.BlockSpec((Cr, C), lambda i: (0, 0)),
                pl.BlockSpec((1, C), lambda i: (0, 0)),
            ],
            out_specs=pl.BlockSpec((bt, C, HW), lambda i: (i, 0, 0)),
        ),
        compiler_params=pltpu.CompilerParams(
            dimension_semantics=("parallel",),
            vmem_limit_bytes=int(budget)),
    )(x3, w1t, b1r, w2t, b2r)
    return out.reshape(B, C, H, W)


# ---------------------------------------------------------------------------
# Two-pass fallback for samples too large for VMEM (channel-tiled)
# ---------------------------------------------------------------------------

def _se_two_pass(x, w1, b1, w2, b2, budget, precision, force_channel_tile=None):
    """Pool pass + scale pass, each channel-tiled (2 HBM reads + 1 write of x).
    Caps VMEM at one channel tile regardless of sample size (needed on v7x)."""
    B, C, H, W = x.shape
    HW = H * W
    dtype = x.dtype
    itemsize = jnp.dtype(dtype).itemsize
    x3 = x.reshape(B, C, HW)
    inv_hw = 1.0 / float(HW)

    if force_channel_tile is not None:
        ct = int(force_channel_tile)
        assert C % ct == 0
    elif C % 8 == 0:
        ct, cand = 8, 8
        while cand <= C:
            if C % cand == 0 and cand * HW * itemsize <= _TARGET_BLOCK_BYTES:
                ct = cand
            cand += 8
    else:
        # TODO(synk): C not a multiple of 8 with a sample too big for VMEM needs
        # an HW-tiled masked reduction; fall back to whole-channel blocks here.
        ct = C
    n_ct = C // ct

    # ---- pass 1: channel-tiled global average pool -------------------------
    def pool_kernel(x_ref, p_ref):
        # x_ref: (1, ct, HW)  p_ref: (1, 1, 1, ct)
        sums = jnp.sum(x_ref[...].astype(jnp.float32), axis=-1) * inv_hw   # (1, ct)
        p_ref[...] = sums[:, None, None, :]

    pooled = pl.pallas_call(
        pool_kernel,
        out_shape=jax.ShapeDtypeStruct((B, n_ct, 1, ct), jnp.float32),
        grid_spec=pltpu.PrefetchScalarGridSpec(
            num_scalar_prefetch=0,
            grid=(B, n_ct),
            in_specs=[pl.BlockSpec((1, ct, HW), lambda b, t: (b, t, 0))],
            out_specs=pl.BlockSpec((1, 1, 1, ct), lambda b, t: (b, t, 0, 0)),
        ),
        compiler_params=pltpu.CompilerParams(
            dimension_semantics=("parallel", "parallel"),
            vmem_limit_bytes=int(budget)),
    )(x3)

    # ---- excite on the tiny (B, C) pooled vector (negligible, plain XLA) ---
    p = pooled.reshape(B, C)
    h = jnp.maximum(jnp.dot(p, jnp.asarray(w1, jnp.float32).T, precision=precision)
                    + jnp.asarray(b1, jnp.float32), 0.0)
    s = (jnp.dot(h, jnp.asarray(w2, jnp.float32).T, precision=precision)
         + jnp.asarray(b2, jnp.float32))
    gate = (jnp.clip(s + 3.0, 0.0, 6.0) / 6.0).astype(dtype).reshape(B, C, 1)

    # ---- pass 2: channel-tiled scale ---------------------------------------
    def scale_kernel(x_ref, g_ref, o_ref):
        o_ref[...] = x_ref[...] * g_ref[...]

    out = pl.pallas_call(
        scale_kernel,
        out_shape=jax.ShapeDtypeStruct((B, C, HW), dtype),
        grid_spec=pltpu.PrefetchScalarGridSpec(
            num_scalar_prefetch=0,
            grid=(B, n_ct),
            in_specs=[pl.BlockSpec((1, ct, HW), lambda b, t: (b, t, 0)),
                      pl.BlockSpec((1, ct, 1), lambda b, t: (b, t, 0))],
            out_specs=pl.BlockSpec((1, ct, HW), lambda b, t: (b, t, 0)),
        ),
        compiler_params=pltpu.CompilerParams(
            dimension_semantics=("parallel", "parallel"),
            vmem_limit_bytes=int(budget)),
    )(x3, gate)
    return out.reshape(B, C, H, W)


# ---------------------------------------------------------------------------
# Public entry point
# ---------------------------------------------------------------------------

def se_module(x, w1, b1, w2, b2, *, _force_two_pass=False, _force_channel_tile=None):
    """SEModule forward.

    x:  (B, C, H, W)  activation (NCHW, as in the PyTorch module)
    w1: (C//r, C)     conv1.weight[:, :, 0, 0]    b1: (C//r,)  conv1.bias
    w2: (C, C//r)     conv2.weight[:, :, 0, 0]    b2: (C,)     conv2.bias
    """
    B, C, H, W = x.shape
    Cr = w1.shape[0]
    HW = H * W
    dtype = x.dtype
    itemsize = jnp.dtype(dtype).itemsize

    # f32 inputs keep full-precision excite dots (PyTorch-f32 fidelity, tiny
    # cost); bf16 inputs use single-pass MXU and bf16-resident weights.
    if dtype == jnp.float32:
        mm_precision, param_dtype = lax.Precision.HIGHEST, jnp.float32
    else:
        mm_precision, param_dtype = lax.Precision.DEFAULT, jnp.bfloat16

    budget = _vmem_budget_bytes()
    flat = (C % 8 != 0)  # small/odd channel counts: avoid wasted sublanes

    per_sample_x = C * HW * itemsize
    static_param = 4 * (2 * C * Cr + C + Cr)
    per_sample_extra = 4 * (2 * C * Cr + C) if flat else 0  # tiled params grow with Bt
    unit = 4 * per_sample_x + 2 * per_sample_extra          # double-buffered in + out
    avail = budget - _VMEM_MARGIN - 2 * static_param
    bt_vmem_cap = avail // unit if avail > 0 else 0

    bt = None
    if not _force_two_pass and bt_vmem_cap >= 1:
        bt = _pick_batch_tile(B, C, per_sample_x, bt_vmem_cap, flat)

    if bt is None:
        return _se_two_pass(x, w1, b1, w2, b2, budget, mm_precision,
                            force_channel_tile=_force_channel_tile)
    if flat:
        return _se_flat(x, w1, b1, w2, b2, bt, budget, mm_precision, param_dtype)
    return _se_blocked(x, w1, b1, w2, b2, bt, budget, mm_precision, param_dtype)


# ---------------------------------------------------------------------------
# Pure-JAX reference (matches the PyTorch forward)
# ---------------------------------------------------------------------------

def se_reference(x, w1, b1, w2, b2):
    pooled = jnp.mean(x.astype(jnp.float32), axis=(2, 3))                  # (B, C)
    h = jnp.maximum(jnp.dot(pooled, jnp.asarray(w1, jnp.float32).T,
                            precision=lax.Precision.HIGHEST)
                    + jnp.asarray(b1, jnp.float32), 0.0)
    s = (jnp.dot(h, jnp.asarray(w2, jnp.float32).T,
                 precision=lax.Precision.HIGHEST)
         + jnp.asarray(b2, jnp.float32))
    gate = (jnp.clip(s + 3.0, 0.0, 6.0) / 6.0).astype(x.dtype)             # hardsigmoid
    return x * gate[:, :, None, None]


if __name__ == "__main__":
    key = jax.random.PRNGKey(0)
    ks = jax.random.split(key, 4)

    def make_params(C, Cr, kseed):
        kw1, kb1, kw2, kb2 = jax.random.split(kseed, 4)
        w1 = jax.random.normal(kw1, (Cr, C), jnp.float32) * 0.5
        b1 = jax.random.normal(kb1, (Cr,), jnp.float32) * 0.1
        w2 = jax.random.normal(kw2, (C, Cr), jnp.float32) * 0.5
        b2 = jax.random.normal(kb2, (C,), jnp.float32) * 0.1
        return w1, b1, w2, b2

    def check(x, params, **kw):
        out = jax.block_until_ready(se_module(x, *params, **kw))
        ref = se_reference(x, *params)
        assert out.shape == x.shape and out.dtype == x.dtype
        err = float(jnp.max(jnp.abs(out.astype(jnp.float32) - ref.astype(jnp.float32))))
        assert err < 1e-4, f"mismatch vs reference, max abs err {err}"

    # 1) Required small config: in_c=4, reduction=4 (flattened small-C path).
    x = jax.random.normal(ks[0], (2, 4, 16, 16), jnp.float32)
    check(x, make_params(4, 1, ks[1]))

    # 2) Channel-multiple-of-8 path ((Bt, C, HW) blocks).
    x = jax.random.normal(ks[2], (2, 8, 8, 8), jnp.float32)
    check(x, make_params(8, 2, ks[2]))

    # 3) Forced two-pass (VMEM-overflow) fallback, channel-tiled.
    x = jax.random.normal(ks[3], (2, 16, 8, 8), jnp.float32)
    check(x, make_params(16, 4, ks[3]), _force_two_pass=True, _force_channel_tile=8)

    print("KERNEL_OK")
</pallas_src>

<mosaic_0001>
module attributes {stable_mosaic.version = 11 : i64} {
  func.func @kernel(%arg0: i32, %arg1: memref<8x256xf32, #tpu.memory_space<vmem>>, %arg2: memref<8x1xf32, #tpu.memory_space<vmem>>, %arg3: memref<1x1xf32, #tpu.memory_space<vmem>>, %arg4: memref<8x1xf32, #tpu.memory_space<vmem>>, %arg5: memref<8x1xf32, #tpu.memory_space<vmem>>, %arg6: memref<8x256xf32, #tpu.memory_space<vmem>>) attributes {dimension_semantics = [#tpu.dimension_semantics<parallel>], iteration_bounds = array<i64: 1>, scalar_prefetch = 0 : i64, scratch_operands = 0 : i64, tpu.core_type = #tpu.core_type<tc>, window_params = [{transform_indices = @transform_0, window_bounds = array<i64: 8, 256>}, {pipeline_mode = #tpu.pipeline_mode<synchronous>, transform_indices = @transform_1, window_bounds = array<i64: 8, 1>}, {pipeline_mode = #tpu.pipeline_mode<synchronous>, transform_indices = @transform_2, window_bounds = array<i64: 1, 1>}, {pipeline_mode = #tpu.pipeline_mode<synchronous>, transform_indices = @transform_3, window_bounds = array<i64: 8, 1>}, {pipeline_mode = #tpu.pipeline_mode<synchronous>, transform_indices = @transform_4, window_bounds = array<i64: 8, 1>}, {transform_indices = @transform_5, window_bounds = array<i64: 8, 256>}]} {
    %c0 = arith.constant 0 : index
    %c0_0 = arith.constant 0 : index
    %0 = vector.load %arg1[%c0, %c0_0] : memref<8x256xf32, #tpu.memory_space<vmem>>, vector<8x256xf32>
    %cst = arith.constant dense<0.000000e+00> : vector<8xf32>
    %1 = vector.multi_reduction <add>, %0, %cst [1] : vector<8x256xf32> to vector<8xf32>
    %2 = vector.shape_cast %1 : vector<8xf32> to vector<8x1xf32>
    %cst_1 = arith.constant 3.906250e-03 : f32
    %3 = vector.broadcast %cst_1 : f32 to vector<8x1xf32>
    %4 = arith.mulf %2, %3 : vector<8x1xf32>
    %5 = tpu.iota {dimensions = array<i32: 1>} : vector<2x8xi32>
    %6 = tpu.iota {dimensions = array<i32: 0>} : vector<2x8xi32>
    %c4_i32 = arith.constant 4 : i32
    %7 = vector.broadcast %c4_i32 : i32 to vector<2x8xi32>
    %8 = arith.muli %6, %7 : vector<2x8xi32>
    %9 = arith.cmpi sge, %5, %8 : vector<2x8xi32>
    %c4_i32_2 = arith.constant 4 : i32
    %10 = vector.broadcast %c4_i32_2 : i32 to vector<2x8xi32>
    %11 = arith.addi %8, %10 : vector<2x8xi32>
    %12 = arith.cmpi slt, %5, %11 : vector<2x8xi32>
    %13 = arith.andi %9, %12 : vector<2x8xi1>
    %14 = arith.extui %13 : vector<2x8xi1> to vector<2x8xi32>
    %15 = arith.sitofp %14 : vector<2x8xi32> to vector<2x8xf32>
    %16 = tpu.iota {dimensions = array<i32: 0>} : vector<8x2xi32>
    %17 = tpu.iota {dimensions = array<i32: 1>} : vector<8x2xi32>
    %c4_i32_3 = arith.constant 4 : i32
    %18 = vector.broadcast %c4_i32_3 : i32 to vector<8x2xi32>
    %19 = arith.muli %17, %18 : vector<8x2xi32>
    %20 = arith.cmpi sge, %16, %19 : vector<8x2xi32>
    %c4_i32_4 = arith.constant 4 : i32
    %21 = vector.broadcast %c4_i32_4 : i32 to vector<8x2xi32>
    %22 = arith.addi %19, %21 : vector<8x2xi32>
    %23 = arith.cmpi slt, %16, %22 : vector<8x2xi32>
    %24 = arith.andi %20, %23 : vector<8x2xi1>
    %25 = arith.extui %24 : vector<8x2xi1> to vector<8x2xi32>
    %26 = arith.sitofp %25 : vector<8x2xi32> to vector<8x2xf32>
    %c0_5 = arith.constant 0 : index
    %c0_6 = arith.constant 0 : index
    %27 = vector.load %arg2[%c0_5, %c0_6] : memref<8x1xf32, #tpu.memory_space<vmem>>, vector<8x1xf32>
    %28 = arith.mulf %4, %27 : vector<8x1xf32>
    %cst_7 = arith.constant dense<0.000000e+00> : vector<2x1xf32>
    %29 = tpu.matmul %15, %28, %cst_7 {dimension_numbers = #tpu.dot_dimension_numbers<[1], [0], [0], [1], [0, 0, 1, 1], [], []>, precision = #tpu.contract_precision<fp32>} : vector<2x8xf32>, vector<8x1xf32>, vector<2x1xf32> -> vector<2x1xf32>
    %c0_8 = arith.constant 0 : index
    %c0_9 = arith.constant 0 : index
    %30 = vector.load %arg3[%c0_8, %c0_9] : memref<1x1xf32, #tpu.memory_space<vmem>>, vector<1x1xf32>
    %31 = vector.broadcast %30 : vector<1x1xf32> to vector<2x1xf32>
    %32 = arith.addf %29, %31 : vector<2x1xf32>
    %cst_10 = arith.constant 0.000000e+00 : f32
    %33 = vector.broadcast %cst_10 : f32 to vector<2x1xf32>
    %34 = arith.maximumf %32, %33 : vector<2x1xf32>
    %cst_11 = arith.constant dense<0.000000e+00> : vector<8x1xf32>
    %35 = tpu.matmul %26, %34, %cst_11 {dimension_numbers = #tpu.dot_dimension_numbers<[1], [0], [0], [1], [0, 0, 1, 1], [], []>, precision = #tpu.contract_precision<fp32>} : vector<8x2xf32>, vector<2x1xf32>, vector<8x1xf32> -> vector<8x1xf32>
    %c0_12 = arith.constant 0 : index
    %c0_13 = arith.constant 0 : index
    %36 = vector.load %arg4[%c0_12, %c0_13] : memref<8x1xf32, #tpu.memory_space<vmem>>, vector<8x1xf32>
    %37 = arith.mulf %35, %36 : vector<8x1xf32>
    %cst_14 = arith.constant dense<0.000000e+00> : vector<8xf32>
    %38 = vector.multi_reduction <add>, %37, %cst_14 [1] : vector<8x1xf32> to vector<8xf32>
    %39 = vector.shape_cast %38 : vector<8xf32> to vector<8x1xf32>
    %c0_15 = arith.constant 0 : index
    %c0_16 = arith.constant 0 : index
    %40 = vector.load %arg5[%c0_15, %c0_16] : memref<8x1xf32, #tpu.memory_space<vmem>>, vector<8x1xf32>
    %41 = arith.addf %39, %40 : vector<8x1xf32>
    %cst_17 = arith.constant 3.000000e+00 : f32
    %42 = vector.broadcast %cst_17 : f32 to vector<8x1xf32>
    %43 = arith.addf %41, %42 : vector<8x1xf32>
    %cst_18 = arith.constant 0.000000e+00 : f32
    %cst_19 = arith.constant 6.000000e+00 : f32
    %44 = vector.broadcast %cst_18 : f32 to vector<8x1xf32>
    %45 = arith.maximumf %44, %43 : vector<8x1xf32>
    %46 = vector.broadcast %cst_19 : f32 to vector<8x1xf32>
    %47 = arith.minimumf %46, %45 : vector<8x1xf32>
    %cst_20 = arith.constant 6.000000e+00 : f32
    %48 = vector.broadcast %cst_20 : f32 to vector<8x1xf32>
    %49 = arith.divf %47, %48 : vector<8x1xf32>
    %c0_21 = arith.constant 0 : index
    %c0_22 = arith.constant 0 : index
    %50 = vector.load %arg1[%c0_21, %c0_22] : memref<8x256xf32, #tpu.memory_space<vmem>>, vector<8x256xf32>
    %51 = vector.broadcast %49 : vector<8x1xf32> to vector<8x256xf32>
    %52 = arith.mulf %50, %51 : vector<8x256xf32>
    %c0_23 = arith.constant 0 : index
    %c0_24 = arith.constant 0 : index
    %53 = vector.load %arg6[%c0_23, %c0_24] : memref<8x256xf32, #tpu.memory_space<vmem>>, vector<8x256xf32>
    tpu.vector_store %arg6[%c0_23, %c0_24], %52 {strides = array<i32>} : memref<8x256xf32, #tpu.memory_space<vmem>>, vector<8x256xf32>,
    return
  }
  func.func @transform_0(%arg0: i32) -> (i32, i32) {
    %c0_i32 = arith.constant 0 : i32
    %c0_i32_0 = arith.constant 0 : i32
    return %arg0, %c0_i32 : i32, i32
  }
  func.func @transform_1(%arg0: i32) -> (i32, i32) {
    %c0_i32 = arith.constant 0 : i32
    %c0_i32_0 = arith.constant 0 : i32
    %c0_i32_1 = arith.constant 0 : i32
    return %c0_i32, %c0_i32_0 : i32, i32
  }
  func.func @transform_2(%arg0: i32) -> (i32, i32) {
    %c0_i32 = arith.constant 0 : i32
    %c0_i32_0 = arith.constant 0 : i32
    %c0_i32_1 = arith.constant 0 : i32
    return %c0_i32, %c0_i32_0 : i32, i32
  }
  func.func @transform_3(%arg0: i32) -> (i32, i32) {
    %c0_i32 = arith.constant 0 : i32
    %c0_i32_0 = arith.constant 0 : i32
    %c0_i32_1 = arith.constant 0 : i32
    return %c0_i32, %c0_i32_0 : i32, i32
  }
  func.func @transform_4(%arg0: i32) -> (i32, i32) {
    %c0_i32 = arith.constant 0 : i32
    %c0_i32_0 = arith.constant 0 : i32
    %c0_i32_1 = arith.constant 0 : i32
    return %c0_i32, %c0_i32_0 : i32, i32
  }
  func.func @transform_5(%arg0: i32) -> (i32, i32) {
    %c0_i32 = arith.constant 0 : i32
    %c0_i32_0 = arith.constant 0 : i32
    return %arg0, %c0_i32 : i32, i32
  }
}

</mosaic_0001>

<bundles_post_ra>
// kernel: tpu_custom_call.1
= control target key start
LH: loop header
LB: loop body
LE: loop exit
PB: predicated region body
PF: predicated region fallthrough
CT: control target
= control target key end

     0   :  { %s1223_s0 = inlined_call_operand.vmem [shape: f32[8,256], index: 0, kind: input, shape index: {}]   ;;  %s1224_s1 = inlined_call_operand.vmem [shape: f32[8,1], index: 1, kind: input, shape index: {}]   ;;  %s1225_s2 = inlined_call_operand.<no memory space> [shape: f32[1,1], index: 2, kind: input, shape index: {}]   ;;  %s1226_s3 = inlined_call_operand.vmem [shape: f32[8,1], index: 3, kind: input, shape index: {}]   ;;  %s1227_s4 = inlined_call_operand.vmem [shape: f32[8,1], index: 4, kind: input, shape index: {}]   ;;  %s1228_s5 = inlined_call_operand.hbm [shape: f32[8,256], index: 5, kind: output, shape index: {}]  }
   0x1   :  { %v10_v0 = vstv %s1225_s2 }
   0x2   :  { %11 = vst [vmem:[#allocation2] sm:$0x1] %v10_v0 }
   0x3   :  { %v1154_v1 = vld [vmem:[%s1223_s0] sm:$0xff]  ;;  %v1159_v2 = vld [vmem:[%s1223_s0 + $0x8] sm:$0xff] }
   0x4   :  { %v25_v3 = vadd.f32 %v1159_v2, %v1154_v1 }
   0x5   :  { %12 = vsyncpa [#allocation4], 0  ;;  %v1114_v4 = vmov 0.0   ;;  %vm1115_vm0 = vmmov 0   ;;  %v29_v5 = vlaneseq  ;;  %vm56_vm4 = vcmask 64512   ;;  %v47_v14 = vld [vmem:[%s1224_s1] sm:$0xff] }
   0x6   :  { %26 = vadd.xlane.f32.xlu0 %v25_v3  ;;  %1027 = vmatprep.subr.mxu0 %v1114_v4  ;;  %vm507_vm8 = vcmask 15360   ;;  %vm511_vm9 = vcmask 1041408   ;;  %v1116_v59 = vmov 0   ;;  %s1117_s27 = smov [#allocation3]  }
   0x7   :  { %1032 = vmatprep.subr.mxu1 %v1114_v4  ;;  %1029 = vmatprep.mubr.msk.f32.mxu0 %vm1115_vm0, %v1114_v4  ;;  %v32_v6 = vshrl.u32 %v29_v5, 7  ;;  %v30_v8 = vand.u32 127, %v29_v5  ;;  %s986_s28 = sshll.u32 %s1117_s27, 4  ;;  %s987_s28 = int_to_ptr.vmem [resolvable:$true] %s986_s28 }
   0x8   :  { %1034 = vmatprep.mubr.msk.f32.mxu1 %vm1115_vm0, %v1114_v4  ;;  %1091 = vset.pattern.permute.xlu0 %v1116_v59  ;;  %p1097_p1 = scmp.lt.s32.totalorder %s987_s28, %s987_s28 }
   0x9   :  { %v33_v7 = vmul.u32 4, %v32_v6  ;;  %v40_v25 = vmul.u32 4, %v30_v8  ;;  %v996_v28 = vld [vmem:[#allocation2] ss:$0 sm:$0xff] }
   0xb   :  { %v35_v9 = vadd.s32 4, %v33_v7  ;;  %vm34_vm1 = vcmp.ge.s32.totalorder %v30_v8, %v33_v7  ;;  %v42_v26 = vadd.s32 4, %v40_v25  ;;  %vm41_vm5 = vcmp.ge.s32.totalorder %v32_v6, %v40_v25 }
   0xd   :  { %vm36_vm2 = vcmp.lt.s32.totalorder %v30_v8, %v35_v9  ;;  %vm43_vm6 = vcmp.lt.s32.totalorder %v32_v6, %v42_v26 }
   0xe   :  { %vm37_vm3 = vmand %vm34_vm1, %vm36_vm2 }
   0xf   :  { %v994_v10 = vsel %vm37_vm3, 1.0, %v1114_v4  ;;  %vm44_vm7 = vmand %vm41_vm5, %vm43_vm6 }
  0x10   :  { %v58_v11 = vsel %vm56_vm4, %v994_v10, 0  ;;  %v995_v30 = vsel %vm44_vm7, 1.0, %v1114_v4 }
  0x11   :  { %v127_v12 = vsub.f32 %v58_v11, %v58_v11  ;;  %v509_v34 = vsel %vm507_vm8, %v995_v30, 0 }
  0x12   :  { %v582_v37 = vsub.f32 %v509_v34, %v509_v34 }
  0x13   :  { %v128_v13 = vand.u32 4294901760, %v127_v12 }
  0x14   :  { %v583_v44 = vand.u32 4294901760, %v582_v37 }
  0x15   :  { %v129_v16 = vsub.f32 %v127_v12, %v128_v13 }
  0x16   :  { %v584_v49 = vsub.f32 %v582_v37, %v583_v44 }
  0x17   :  { %v130_v19 = vand.u32 4294901760, %v129_v16 }
  0x18   :  { %v585_v53 = vand.u32 4294901760, %v584_v49 }
  0x8f   :  { %v27_v15 = vpop.xlane.xlu0 %26 }
  0x90   :  { %v28_v17 = vmul.f32 0.00390625, %v27_v15  ;;  %v964_v15 = vld [vmem:[%s1227_s4] sm:$0xff] }
  0x92   :  { %v48_v18 = vmul.f32 %v47_v14, %v28_v17 }
  0x94   :  { %v91_v20 = vand.u32 4294901760, %v48_v18 }
  0x96   :  { %v168_v21 = vsub.f32 %v48_v18, %v91_v20  ;;  %1028 = vmatpush3.msra.mxu0 %v91_v20 }
  0x97   :  { %1030 = vmatmul.mubr.f32.vlgmr.msra.gmra.mxu0 %v130_v19  ;;  %1037 = vmatprep.subr.mxu0 %v1114_v4 }
  0x98   :  { %1038 = vmatpush3.msra.mxu0 %v168_v21  ;;  %1039 = vmatprep.mubr.msk.f32.mxu0 %vm1115_vm0, %v1114_v4  ;;  %v169_v22 = vand.u32 4294901760, %v168_v21 }
  0x99   :  { %1047 = vmatprep.subr.mxu0 %v1114_v4 }
  0x9a   :  { %v170_v23 = vsub.f32 %v168_v21, %v169_v22 }
  0x9b   :  { %1040 = vmatmul.mubr.f32.vlgmr.msra.gmra.mxu0 %v127_v12 }
  0x9c   :  { %1048 = vmatpush3.msra.mxu0 %v169_v22  ;;  %v171_v24 = vand.u32 4294901760, %v170_v23  ;;  %1049 = vmatprep.mubr.msk.f32.mxu0 %vm1115_vm0, %v1114_v4 }
  0x9d   :  { %1057 = vmatprep.subr.mxu0 %v1114_v4 }
  0x9e   :  { %1033 = vmatpush3.msra.mxu1 %v171_v24 }
  0x9f   :  { %1035 = vmatmul.mubr.msk.f32.vlgmr.msra.gmra.mxu1 %vm56_vm4, %v994_v10  ;;  %1042 = vmatprep.subr.mxu1 %v1114_v4 }
  0xa0   :  { %1043 = vmatpush3.msra.mxu1 %v91_v20  ;;  %1044 = vmatprep.mubr.msk.f32.mxu1 %vm1115_vm0, %v1114_v4 }
  0xa1   :  { %1052 = vmatprep.subr.mxu1 %v1114_v4  ;;  %1050 = vmatmul.mubr.msk.f32.vlgmr.msra.gmra.mxu0 %vm56_vm4, %v994_v10 }
  0xa2   :  { %1059 = vmatprep.mubr.msk.f32.mxu0 %vm1115_vm0, %v1114_v4 }
  0xa3   :  { %1045 = vmatmul.mubr.f32.vlgmr.msra.gmra.mxu1 %v128_v13 }
  0xa4   :  { %1053 = vmatpush3.msra.mxu1 %v91_v20  ;;  %1054 = vmatprep.mubr.msk.f32.mxu1 %vm1115_vm0, %v1114_v4 }
  0xa5   :  { %1062 = vmatprep.subr.mxu1 %v1114_v4 }
  0xa7   :  { %1055 = vmatmul.mubr.msk.f32.vlgmr.msra.gmra.mxu1 %vm56_vm4, %v994_v10 }
  0xa8   :  { %1064 = vmatprep.mubr.msk.f32.mxu1 %vm1115_vm0, %v1114_v4 }
 0x157   :  { %v132_v27 = vpop.f32.mrf.mxu0 }
 0x158   :  { %v133_v32 = vadd.f32 %v996_v28, %v132_v27 }
 0x159   :  { %v1031_v29 = vpop.f32.mrf.mxu0 }
 0x15b   :  { %v282_v31 = vpop.f32.mrf.mxu0 }
 0x15d   :  { %v1041_v33 = vpop.f32.mrf.mxu0 }
 0x15f   :  { %v208_v35 = vpop.f32.mrf.mxu1 }
 0x160   :  { %v209_v36 = vadd.f32 %v208_v35, %v133_v32 }
 0x161   :  { %v1036_v38 = vpop.f32.mrf.mxu1  ;;  %v430_v39 = vpop.f32.mrf.mxu0 }
 0x162   :  { %v283_v40 = vadd.f32 %v282_v31, %v209_v36 }
 0x163   :  { %v356_v41 = vpop.f32.mrf.mxu1  ;;  %v1051_v42 = vpop.f32.mrf.mxu0 }
 0x164   :  { %v357_v43 = vadd.f32 %v356_v41, %v283_v40 }
 0x165   :  { %v1046_v45 = vpop.f32.mrf.mxu1 }
 0x166   :  { %v431_v46 = vadd.f32 %v430_v39, %v357_v43 }
 0x167   :  { %v502_v47 = vpop.f32.mrf.mxu1 }
 0x168   :  { %v503_v48 = vadd.f32 %v502_v47, %v431_v46 }
 0x169   :  { %v1056_v50 = vpop.f32.mrf.mxu1 }
 0x16a   :  { %v506_v51 = vmax.f32 %v503_v48, 0.0 }
 0x16c   :  { %v513_v52 = vsel %vm511_vm9, %v506_v51, 0 }
 0x16d   :  { %v546_v54 = vand.u32 4294901760, %v513_v52 }
 0x16f   :  { %v623_v55 = vsub.f32 %v513_v52, %v546_v54  ;;  %1058 = vmatpush3.msra.mxu0 %v546_v54 }
 0x170   :  { %1060 = vmatmul.mubr.f32.vlgmr.msra.gmra.mxu0 %v585_v53  ;;  %1067 = vmatprep.subr.mxu0 %v1114_v4 }
 0x171   :  { %1068 = vmatpush3.msra.mxu0 %v623_v55  ;;  %1069 = vmatprep.mubr.msk.f32.mxu0 %vm1115_vm0, %v1114_v4  ;;  %v624_v56 = vand.u32 4294901760, %v623_v55 }
 0x172   :  { %1077 = vmatprep.subr.mxu0 %v1114_v4 }
 0x173   :  { %v625_v57 = vsub.f32 %v623_v55, %v624_v56 }
 0x174   :  { %1070 = vmatmul.mubr.f32.vlgmr.msra.gmra.mxu0 %v582_v37 }
 0x175   :  { %1078 = vmatpush3.msra.mxu0 %v624_v56  ;;  %v626_v58 = vand.u32 4294901760, %v625_v57  ;;  %1079 = vmatprep.mubr.msk.f32.mxu0 %vm1115_vm0, %v1114_v4 }
 0x177   :  { %1063 = vmatpush3.msra.mxu1 %v626_v58 }
 0x178   :  { %1065 = vmatmul.mubr.msk.f32.vlgmr.msra.gmra.mxu1 %vm507_vm8, %v995_v30  ;;  %1072 = vmatprep.subr.mxu1 %v1114_v4 }
 0x179   :  { %1073 = vmatpush3.msra.mxu1 %v546_v54  ;;  %1074 = vmatprep.mubr.msk.f32.mxu1 %vm1115_vm0, %v1114_v4 }
 0x17a   :  { %1082 = vmatprep.subr.mxu1 %v1114_v4  ;;  %1080 = vmatmul.mubr.msk.f32.vlgmr.msra.gmra.mxu0 %vm507_vm8, %v995_v30 }
 0x17c   :  { %1075 = vmatmul.mubr.f32.vlgmr.msra.gmra.mxu1 %v583_v44 }
 0x17d   :  { %1083 = vmatpush3.msra.mxu1 %v546_v54  ;;  %1084 = vmatprep.mubr.msk.f32.mxu1 %vm1115_vm0, %v1114_v4  ;;  %v961_v4 = vld [vmem:[%s1226_s3] sm:$0xff]  ;;  %s1092_s3 = scalar_lea.vmem %s987_s28, 256 }
 0x17e   :  { %p1093_p0 = scmp.ne.s32.totalorder %s987_s28, %s1092_s3  ;;  %p1098_p2 = scmp.lt.s32.totalorder %s1092_s3, %s1092_s3 }
 0x180   :  { %1085 = vmatmul.mubr.msk.f32.vlgmr.msra.gmra.mxu1 %vm507_vm8, %v995_v30  ;;  %p1099_p3 = por %p1098_p2, %p1097_p1 }
 0x182   :  { %p1100_p4 = pnand %p1099_p3, %p1093_p0 }
 0x230   :  { %v587_v60 = vpop.f32.mrf.mxu0 }
 0x232   :  { %v1061_v61 = vpop.f32.mrf.mxu0 }
 0x234   :  { %v737_v62 = vpop.f32.mrf.mxu0 }
 0x236   :  { %v1071_v63 = vpop.f32.mrf.mxu0 }
 0x238   :  { %v663_v0 = vpop.f32.mrf.mxu1 }
 0x239   :  { %v664_v3 = vadd.f32 %v663_v0, %v587_v60 }
 0x23a   :  { %v1066_v5 = vpop.f32.mrf.mxu1  ;;  %v885_v6 = vpop.f32.mrf.mxu0 }
 0x23b   :  { %v738_v7 = vadd.f32 %v737_v62, %v664_v3 }
 0x23c   :  { %v811_v8 = vpop.f32.mrf.mxu1  ;;  %v1081_v9 = vpop.f32.mrf.mxu0 }
 0x23d   :  { %v812_v10 = vadd.f32 %v811_v8, %v738_v7 }
 0x23e   :  { %v1076_v11 = vpop.f32.mrf.mxu1 }
 0x23f   :  { %v886_v12 = vadd.f32 %v885_v6, %v812_v10 }
 0x240   :  { %v957_v13 = vpop.f32.mrf.mxu1 }
 0x241   :  { %v958_v14 = vadd.f32 %v957_v13, %v886_v12 }
 0x242   :  { %v1086_v16 = vpop.f32.mrf.mxu1 }
 0x243   :  { %v962_v17 = vmul.f32 %v961_v4, %v958_v14 }
 0x245   :  { %v965_v18 = vadd.f32 %v964_v15, %v962_v17 }
 0x247   :  { %v966_v19 = vadd.f32 3.0, %v965_v18 }
 0x249   :  { %v967_v20 = vmax.f32 %v966_v19, 0.0 }
 0x24b   :  { %v968_v21 = vmin.f32 %v967_v20, 6.0 }
 0x24d   :  { %v970_v22 = vmul.f32 0.16666667, %v968_v21 }
 0x24f   :  { %973 = vperm.xlu0 %1091, %v970_v22  }
 0x2ca   :  { %v974_v23 = vpop.permute.xlu0 %973 }
 0x2cb   :  { %v976_v24 = vmul.f32 %v974_v23, %v1154_v1  ;;  %v977_v25 = vmul.f32 %v974_v23, %v1159_v2 }
 0x2cd   :  { %978 = vst [vmem:[#allocation3] sm:$0xff] %v976_v24  ;;  %979 = vst [vmem:[#allocation3 + $0x8] sm:$0xff] %v977_v25 }
 0x2ce   :  { %1103 = shalt.err (!%p1100_p4)
}
 0x2cf   :  { %989 = dma.vmem_to_hbm [thread:$0]  %s987_s28, 256, %s1228_s5, [#allocation4]  }
 0x2d0   :  { %1112 = dma.done.wait [#allocation4], 256  }
 0x2d1   :  { %1113 = vsyncadd [#allocation4], 4294967040 }
 0x2d2   :  { %993 = vsyncpa [#allocation4], 1 }

</bundles_post_ra>
